<compile_context>
chip_gen: v5e
topology: v5e:2x2
jax: 0.10.0
libtpu: 0.0.40
codegen_flags: <defaults>
</compile_context>

<pallas_src>
import jax
import jax.numpy as jnp
from jax.experimental import pallas as pl
from jax.experimental.pallas import tpu as pltpu


def _round_up(x, m):
    return ((x + m - 1) // m) * m


def _vmem_capacity_bytes():
    try:
        return int(pltpu.get_tpu_info().vmem_capacity_bytes)
    except Exception:
        return 64 * 1024 * 1024  # v7x per-core physical VMEM (smallest gen)


def _step_vmem_bytes(tile_n, patch_dim, e_cols):
    # Double-buffered pipeline: 2 buffers per operand (even the resident
    # weight / positions blocks) plus the f32 output tile.
    patches = tile_n * patch_dim * 2          # bf16
    pos = tile_n * e_cols * 4                 # f32
    out = tile_n * e_cols * 4                 # f32
    w = patch_dim * e_cols * 2                # bf16
    return 2 * (patches + pos + out + w)


def _pick_tile_n(n, b, patch_dim, e_cols, budget_bytes):
    # Candidates: full-N (always legal) plus 8-multiple divisors of N,
    # largest first (per-step overhead amortization).
    cands = sorted(
        {n} | {t for t in (2048, 1024, 512, 256, 128, 64, 32, 16, 8)
               if t < n and n % t == 0},
        reverse=True)
    fitting = [t for t in cands
               if _step_vmem_bytes(t, patch_dim, e_cols) <= budget_bytes]
    if not fitting:
        fitting = [cands[-1]]
    if b == 1:
        # v7x has 2 TensorCores: make sure the grid has >= 2 parallel steps.
        multi = [t for t in fitting if n // t >= 2]
        if multi:
            return multi[0]
    return fitting[0]


def _patch_embed_kernel(patches_ref, w_ref, pos_ref, o_ref):
    # patches_ref: (TILE_N, patch_dim) bf16   w_ref: (patch_dim, E_cols) bf16
    # pos_ref:     (TILE_N, E_cols)    f32    o_ref: (TILE_N, E_cols)    f32
    proj = jnp.dot(patches_ref[...], w_ref[...],
                   preferred_element_type=jnp.float32)
    o_ref[...] = (proj + pos_ref[...]).astype(o_ref.dtype)


def patch_embedding(x_nchw, conv_w, conv_b, cls_token, positions, patch_size):
    """x_nchw: (B, C, H, W).  conv_w: (E, C, P, P).  conv_b: (E,).
    cls_token: (1, 1, E).  positions: (N+1, E).  Returns (B, N+1, E) f32."""
    B, C, H, W = x_nchw.shape
    P = patch_size
    E = conv_w.shape[0]
    assert H % P == 0 and W % P == 0
    nh, nw = H // P, W // P
    N = nh * nw
    patch_dim = C * P * P

    pad_e = (E % 128) != 0
    e_cols = _round_up(E, 128) if pad_e else E

    cap = _vmem_capacity_bytes()
    tile_n = _pick_tile_n(N, B, patch_dim, e_cols, int(cap * 0.55))
    grid_n = N // tile_n
    step_bytes = _step_vmem_bytes(tile_n, patch_dim, e_cols)
    vmem_limit = int(min(cap, max(2 * step_bytes + (8 << 20), 32 << 20)))

    # ---- Patchify: ONE fused XLA pass (cast + transpose + reshape), bf16.
    #      (B, C, H, W) -> (B, N, C*P*P), per-patch column order (c, ph, pw).
    patches = x_nchw.astype(jnp.bfloat16).reshape(B, C, nh, P, nw, P)
    patches = patches.transpose(0, 2, 4, 1, 3, 5).reshape(B, N, patch_dim)

    # ---- Conv weight -> (patch_dim, E_cols) bf16 matmul weight (DMA'd once).
    w_mat = conv_w.reshape(E, patch_dim).T.astype(jnp.bfloat16)
    # ---- Positions for the patch rows, conv bias folded in (f32).
    pos_body = (positions[1:, :] + conv_b[None, :]).astype(jnp.float32)
    if pad_e:
        w_mat = jnp.pad(w_mat, ((0, 0), (0, e_cols - E)))
        pos_body = jnp.pad(pos_body, ((0, 0), (0, e_cols - E)))

    body = pl.pallas_call(
        _patch_embed_kernel,
        out_shape=jax.ShapeDtypeStruct((B, N, e_cols), jnp.float32),
        grid_spec=pltpu.PrefetchScalarGridSpec(
            num_scalar_prefetch=0,
            # Sequence-tile axis OUTER, batch INNER: the positions block
            # index (n, 0) is constant along the inner axis, so it is
            # streamed from HBM exactly once; the weight (0, 0) never moves.
            grid=(grid_n, B),
            in_specs=[
                pl.BlockSpec((pl.Squeezed(), tile_n, patch_dim),
                             lambda n, b: (b, n, 0)),
                pl.BlockSpec((patch_dim, e_cols), lambda n, b: (0, 0)),
                pl.BlockSpec((tile_n, e_cols), lambda n, b: (n, 0)),
            ],
            out_specs=pl.BlockSpec((pl.Squeezed(), tile_n, e_cols),
                                   lambda n, b: (b, n, 0)),
        ),
        compiler_params=pltpu.CompilerParams(
            dimension_semantics=("parallel", "parallel"),
            vmem_limit_bytes=vmem_limit),
    )(patches, w_mat, pos_body)

    if pad_e:
        body = body[:, :, :E]  # drop lane padding (skipped when E % 128 == 0)

    # cls row is batch-invariant: compute once, prepend outside the kernel.
    cls_row = (cls_token.reshape(1, E) + positions[0:1, :]).astype(jnp.float32)
    cls_rows = jnp.broadcast_to(cls_row[None, :, :], (B, 1, E))
    # TODO(synk): return (cls_rows, body) to consumers that accept the split
    # form, avoiding this full read+write pass over the (B, N+1, E) result.
    return jnp.concatenate([cls_rows, body], axis=1)


def _reference(x_nchw, conv_w, conv_b, cls_token, positions, patch_size):
    """Pure-JAX f32 reference reproducing the PyTorch forward semantics."""
    B, C, H, W = x_nchw.shape
    P = patch_size
    E = conv_w.shape[0]
    nh, nw = H // P, W // P
    N = nh * nw
    patches = x_nchw.reshape(B, C, nh, P, nw, P).transpose(0, 2, 4, 1, 3, 5)
    patches = patches.reshape(B, N, C * P * P)
    proj = patches @ conv_w.reshape(E, C * P * P).T + conv_b[None, None, :]
    cls = jnp.broadcast_to(cls_token, (B, 1, E))
    seq = jnp.concatenate([cls, proj], axis=1)
    return seq + positions[None, :, :]


if __name__ == "__main__":
    # Small config consistent with the module: in_channels=4, patch_size=4,
    # emb_size=32, img_size=16  ->  N_patches=16, seq_len=17.
    B, C, IMG, P, E = 2, 4, 16, 4, 32
    N = (IMG // P) ** 2

    key = jax.random.PRNGKey(0)
    k_x, k_w, k_b, k_cls, k_pos = jax.random.split(key, 5)
    x = jax.random.normal(k_x, (B, C, IMG, IMG), dtype=jnp.float32)
    conv_w = jax.random.normal(k_w, (E, C, P, P), dtype=jnp.float32) * 0.02
    conv_b = jax.random.normal(k_b, (E,), dtype=jnp.float32) * 0.02
    cls_token = jax.random.normal(k_cls, (1, 1, E), dtype=jnp.float32)
    positions = jax.random.normal(k_pos, (N + 1, E), dtype=jnp.float32)

    out = patch_embedding(x, conv_w, conv_b, cls_token, positions, P)
    out = jax.block_until_ready(out)

    ref = _reference(x, conv_w, conv_b, cls_token, positions, P)
    assert out.shape == (B, N + 1, E), out.shape
    # bf16 matmul operands with f32 accumulation -> loosened tolerance.
    assert jnp.allclose(out, ref, atol=2e-2, rtol=2e-2), float(
        jnp.max(jnp.abs(out - ref)))
    print("KERNEL_OK")
</pallas_src>

<mosaic_0001>
module attributes {stable_mosaic.version = 11 : i64} {
  func.func @_patch_embed_kernel(%arg0: i32, %arg1: i32, %arg2: memref<1x16x64xbf16, #tpu.memory_space<vmem>>, %arg3: memref<64x128xbf16, #tpu.memory_space<vmem>>, %arg4: memref<16x128xf32, #tpu.memory_space<vmem>>, %arg5: memref<1x16x128xf32, #tpu.memory_space<vmem>>) attributes {dimension_semantics = [#tpu.dimension_semantics<parallel>, #tpu.dimension_semantics<parallel>], iteration_bounds = array<i64: 1, 2>, scalar_prefetch = 0 : i64, scratch_operands = 0 : i64, tpu.core_type = #tpu.core_type<tc>, window_params = [{transform_indices = @transform_0, window_bounds = array<i64: 1, 16, 64>}, {pipeline_mode = #tpu.pipeline_mode<synchronous>, transform_indices = @transform_1, window_bounds = array<i64: 64, 128>}, {transform_indices = @transform_2, window_bounds = array<i64: 16, 128>}, {transform_indices = @transform_3, window_bounds = array<i64: 1, 16, 128>}]} {
    %c0 = arith.constant 0 : index
    %c0_0 = arith.constant 0 : index
    %c0_1 = arith.constant 0 : index
    %0 = vector.load %arg2[%c0, %c0_0, %c0_1] : memref<1x16x64xbf16, #tpu.memory_space<vmem>>, vector<1x16x64xbf16>
    %1 = vector.shape_cast %0 : vector<1x16x64xbf16> to vector<16x64xbf16>
    %c0_2 = arith.constant 0 : index
    %c0_3 = arith.constant 0 : index
    %2 = vector.load %arg3[%c0_2, %c0_3] : memref<64x128xbf16, #tpu.memory_space<vmem>>, vector<64x128xbf16>
    %cst = arith.constant dense<0.000000e+00> : vector<16x128xf32>
    %3 = tpu.matmul %1, %2, %cst {dimension_numbers = #tpu.dot_dimension_numbers<[1], [0], [0], [1], [0, 0, 1, 1], [], []>} : vector<16x64xbf16>, vector<64x128xbf16>, vector<16x128xf32> -> vector<16x128xf32>
    %c0_4 = arith.constant 0 : index
    %c0_5 = arith.constant 0 : index
    %4 = vector.load %arg4[%c0_4, %c0_5] : memref<16x128xf32, #tpu.memory_space<vmem>>, vector<16x128xf32>
    %5 = arith.addf %3, %4 : vector<16x128xf32>
    %c0_6 = arith.constant 0 : index
    %c0_7 = arith.constant 0 : index
    %c0_8 = arith.constant 0 : index
    %6 = vector.load %arg5[%c0_6, %c0_7, %c0_8] : memref<1x16x128xf32, #tpu.memory_space<vmem>>, vector<1x16x128xf32>
    %7 = vector.shape_cast %6 : vector<1x16x128xf32> to vector<16x128xf32>
    %8 = vector.shape_cast %5 : vector<16x128xf32> to vector<1x16x128xf32>
    tpu.vector_store %arg5[%c0_6, %c0_7, %c0_8], %8 {strides = array<i32>} : memref<1x16x128xf32, #tpu.memory_space<vmem>>, vector<1x16x128xf32>,
    return
  }
  func.func @transform_0(%arg0: i32, %arg1: i32) -> (i32, i32, i32) {
    %c0_i32 = arith.constant 0 : i32
    %c0_i32_0 = arith.constant 0 : i32
    return %arg1, %arg0, %c0_i32 : i32, i32, i32
  }
  func.func @transform_1(%arg0: i32, %arg1: i32) -> (i32, i32) {
    %c0_i32 = arith.constant 0 : i32
    %c0_i32_0 = arith.constant 0 : i32
    %c0_i32_1 = arith.constant 0 : i32
    return %c0_i32, %c0_i32_0 : i32, i32
  }
  func.func @transform_2(%arg0: i32, %arg1: i32) -> (i32, i32) {
    %c0_i32 = arith.constant 0 : i32
    %c0_i32_0 = arith.constant 0 : i32
    return %arg0, %c0_i32 : i32, i32
  }
  func.func @transform_3(%arg0: i32, %arg1: i32) -> (i32, i32, i32) {
    %c0_i32 = arith.constant 0 : i32
    %c0_i32_0 = arith.constant 0 : i32
    return %arg1, %arg0, %c0_i32 : i32, i32, i32
  }
}

</mosaic_0001>

<bundles_post_ra>
// kernel: tpu_custom_call.1
= control target key start
LH: loop header
LB: loop body
LE: loop exit
PB: predicated region body
PF: predicated region fallthrough
CT: control target
= control target key end

     0   :  { %8 = vsyncpa [#allocation3], 0  ;;  %s936_s0 = inlined_call_operand.hbm [shape: bf16[2,16,64], index: 0, kind: input, shape index: {}]   ;;  %s937_s1 = inlined_call_operand.hbm [shape: bf16[64,128], index: 1, kind: input, shape index: {}]   ;;  %s938_s2 = inlined_call_operand.hbm [shape: f32[16,128], index: 2, kind: input, shape index: {}]   ;;  %s939_s3 = inlined_call_operand.hbm [shape: f32[2,16,128], index: 3, kind: output, shape index: {}]  }
   0x1   :  { %10 = vsyncpa [#allocation3 + $0x1], 0 }
   0x2   :  { %11 = vsyncpa [#allocation6], 0 }
   0x3   :  { %12 = vsyncpa [#allocation4], 0 }
   0x4   :  { %14 = vsyncpa [#allocation4 + $0x1], 0  ;;  %s783_s12 = smov 0   ;;  %s785_s13 = smov 0  }
   0x5   :  { %s787_s14 = smov 0   ;;  %s789_s15 = smov 0  }
   0x6   :  { %s791_s16 = smov 0   ;;  %s793_s17 = smov 0  }
   0x7 LB: > { %s441_s18 = sadd.s32 4294967295, %s753_s17   ;;  %s442_s19 = sadd.s32 4294967294, %s753_s17   ;;  %s753_s17 = sphi %s793_s17, %s20_s17   ;;  %s749_s16 = sphi %s791_s16, %s949_s16   ;;  %s745_s15 = sphi %s789_s15, %s948_s15   ;;  %s741_s14 = sphi %s787_s14, %s947_s14   ;;  %s737_s13 = sphi %s785_s13, %s946_s13   ;;  %s733_s12 = sphi %s783_s12, %s945_s12  }
   0x8   : > { %p54_p0 = scmp.ne.s32.totalorder %s737_s13, %s733_s12  ;;  %p819_p1 = scmp.eq.s32.totalorder %s441_s18, 0 }
   0x9   : > { %p133_p2 = scmp.eq.s32.totalorder %s442_s19, 1  ;;  %p443_p4 = scmp.ge.s32.totalorder %s753_s17, 1 }
   0xa   : > { %p825_p3 = por %p819_p1, %p54_p0  ;;  %p140_p6 = scmp.lt.s32.totalorder %s753_s17, 3 }
   0xb   : > { %p830_p5 = por %p133_p2, %p54_p0  ;;  %s151_s25 = sshll.u32 %s937_s1, 4  ;;  %s152_s25 = int_to_ptr.hbm [resolvable:$true] %s151_s25 }
   0xc   : > { %p838_p7 = pnand %p443_p4, %p140_p6  ;;  %s755_s27 = smov [#allocation5]  }
   0xd   : > { %s153_s28 = sshll.u32 %s755_s27, 4  ;;  %p446_p10 = scmp.ge.s32.totalorder %s753_s17, 2  ;;  %s154_s28 = int_to_ptr.vmem [resolvable:$true] %s153_s28 }
   0xe   : > { %p500_p8 = pneg %p838_p7  ;;  %s168_s4 = sshll.u32 %s938_s2, 4  ;;  %s169_s4 = int_to_ptr.hbm [resolvable:$true] %s168_s4 }
   0xf   : > { %s756_s5 = smov 64   ;;  %s757_s6 = smov 4  }
  0x10   : > { %p501_p9 = pnand %p500_p8, %p819_p1  ;;  %s758_s7 = smov [#allocation7]  }
  0x11   : > { %s170_s8 = sshll.u32 %s758_s7, 4  ;;  %s759_s9 = smov 128   ;;  %s171_s8 = int_to_ptr.vmem [resolvable:$true] %s170_s8 }
  0x12   : > { %503 = dma.hbm_to_vmem [thread:$0]  (!%p501_p9), %s152_s25, 512, %s154_s28, [#allocation6], %s756_s5, %s756_s5, %s757_s6  }
  0x13   : > { %s760_s10 = smov 8   ;;  %p127_p11 = scmp.eq.s32.totalorder %s441_s18, 1 }
  0x14   : > { %506 = dma.hbm_to_vmem [thread:$0]  (!%p501_p9), %s169_s4, 256, %s171_s8, [#allocation6], %s759_s9, %s759_s9, %s760_s10  }
  0x15   : > { %s29_s11 = sadd.s32 1, %s749_s16  ;;  %s41_s19 = sadd.s32 1, %s741_s14 }
  0x16   : > { %p30_p12 = scmp.ge.s32.totalorder %s29_s11, 2  ;;  %p48_p13 = scmp.ne.s32.totalorder %s741_s14, %s737_s13 }
  0x17   : > { %p49_p0 = scmp.eq.s32.totalorder %s753_s17, 0  ;;  %p517_p4 = scmp.lt.s32.totalorder %s753_s17, 2 }
  0x18   : > { %s951_s11 = smov (%p30_p12, %s29_s11), 0  ;;  %p862_p2 = por %p127_p11, %p48_p13 }
  0x19   : > { %s36_s24 = ssub.s32 %s749_s16, %s951_s11  ;;  %s184_s25 = sand.u32 1, %s741_s14  }
  0x1a   : > { %p39_p6 = scmp.eq.s32.totalorder %s36_s24, 0  ;;  %p50_p8 = por %p49_p0, %p48_p13 }
  0x1b   : > { %s447_s27 = sshll.u32 %s184_s25, 3  ;;  %s481_s18 = sshll.u32 %s749_s16, 3 }
  0x1c   : > { %s872_s28 = scalar_select %p39_p6, %s741_s14, %s41_s19  }
  0x1d   : > { %s195_s4 = scalar_lea.hbm %s936_s0, %s481_s18  ;;  %s188_s8 = scalar_lea.vmem [#allocation2], %s447_s27 }
  0x1e   : > { %s196_s7 = sshll.u32 %s195_s4, 4  ;;  %s198_s9 = sshll.u32 %s188_s8, 4  ;;  %s197_s7 = int_to_ptr.hbm [resolvable:$true] %s196_s7  ;;  %s199_s9 = int_to_ptr.vmem [resolvable:$true] %s198_s9 }
  0x1f   : > { %p508_p9 = pnand %p517_p4, %p50_p8  ;;  %s185_s10 = scalar_lea.sflag [#allocation3], %s184_s25 }
  0x20   : > { %210 = sbr.rel (%p838_p7) target bundleno = 196 (0xc4), region = 32  ;;  %s885_s19 = sand.u32 (!%p838_p7), 1, %s737_s13  }
  0x21   : > { %510 = dma.hbm_to_vmem [thread:$0]  (!%p508_p9), %s197_s7, 128, %s199_s9, %s185_s10, %s756_s5, %s756_s5, %s757_s6  }
  0x22   : > { %s451_s24 = sshll.u32 (!%p838_p7), %s885_s19, 3  ;;  %s213_s27 = scalar_lea.sflag (!%p838_p7), [#allocation3], %s885_s19 }
  0x23   : > { %s216_s18 = scalar_lea.vmem (!%p838_p7), [#allocation2], %s451_s24 }
  0x25   : > { %720 = dma.done.wait (%p825_p3), %s213_s27, 128  }
  0x26   : > { %722 = vsyncadd (%p825_p3), %s213_s27, 4294967168 }
  0x27   : > { %724 = dma.done.wait (%p819_p1), [#allocation6], 768  }
  0x28   : > { %726 = vsyncadd (%p819_p1), [#allocation6], 4294966528  ;;  %v486_v0 = vld [vmem:[#allocation5 + $0x18] sm:$0xff]  ;;  %v485_v1 = vld [vmem:[#allocation5 + $0x10] sm:$0xff]  ;;  %vm295_vm0 = vcmask 523264   ;;  %s454_s21 = sshll.u32 %s885_s19, 4 }
  0x29   : > { %303 = vmatpush.bf16.msra.mxu0 %v486_v0  ;;  %v484_v2 = vld [vmem:[#allocation5 + $0x8] sm:$0xff]  ;;  %v483_v3 = vld [vmem:[#allocation5] sm:$0xff]  ;;  %v482_v4 = vld [vmem:[%s216_s18] sm:$0xff]  ;;  %s487_s26 = sshll.u32 %s745_s15, 4  ;;  %s249_s25 = scalar_lea.vmem [#allocation8], %s454_s21 }
  0x2a   : > { %v264_v5 = vld [vmem:[#allocation7] sm:$0xff]  ;;  %s329_s6 = scalar_lea.hbm %s939_s3, %s487_s26  ;;  %s330_s29 = sshll.u32 %s249_s25, 4  ;;  %v265_v8 = vld [vmem:[#allocation7 + $0x8] sm:$0xff]  ;;  %s331_s29 = int_to_ptr.vmem [resolvable:$true] %s330_s29 }
  0x2b   : > { %s332_s30 = sshll.u32 %s329_s6, 4  ;;  %s316_s4 = scalar_lea.sflag [#allocation4], %s885_s19  ;;  %s333_s30 = int_to_ptr.hbm [resolvable:$true] %s332_s30 }
  0x2c   : > { %s681_s7 = sshra.s32 %s333_s30, 4  ;;  %s687_s10 = scalar_lea.hbm %s939_s3, 32  ;;  %s682_s7 = int_to_ptr.hbm [resolvable:$true] %s681_s7 }
  0x2d   : > { %304 = vmatpush.bf16.msra.mxu0 %v485_v1  ;;  %s683_s15 = scalar_lea.hbm %s682_s7, 16  ;;  %p688_p11 = scmp.lt.s32.totalorder %s682_s7, %s939_s3 }
  0x2e   : > { %p684_p1 = scmp.ne.s32.totalorder %s682_s7, %s683_s15  ;;  %p689_p12 = scmp.lt.s32.totalorder %s687_s10, %s683_s15 }
  0x30   : > { %p685_p3 = pnand %p684_p1, %p862_p2  ;;  %p690_p13 = por %p689_p12, %p688_p11 }
  0x31   : > { %305 = vmatpush.bf16.msra.mxu0 %v484_v2 }
  0x32   : > { %p686_p7 = pneg %p685_p3 }
  0x34   : > { %p691_p0 = pnand %p690_p13, %p686_p7 }
  0x35   : > { %306 = vmatpush.bf16.msra.mxu0 %v483_v3 }
  0x38   : > { %475 = vmatmul.msk.bf16.vlgmr.msra.gmra.mxu0 %vm295_vm0, %v482_v4 }
  0xb5   : > { %v308_v6 = vpop.f32.mrf.mxu0 }
  0xb6   : > { %v309_v7 = vadd.f32 %v308_v6, %v264_v5 }
  0xb8   : > { %313 = vst [vmem:[%s249_s25] sm:$0xff] %v309_v7 }
  0xbd   : > { %v310_v9 = vpop.f32.mrf.mxu0 }
  0xbe   : > { %v311_v10 = vadd.f32 %v310_v9, %v265_v8 }
  0xc0   : > { %314 = vst [vmem:[%s249_s25 + $0x8] sm:$0xff] %v311_v10 }
  0xc1   : > { %694 = shalt.err (!%p691_p0)
}
  0xc2   : > { %s761_s19 = smov 128   ;;  %s762_s18 = smov 8  }
  0xc3   : > { %498 = dma.vmem_to_hbm [thread:$0]  (%p862_p2), %s331_s29, 256, %s333_s30, %s316_s4, %s761_s19, %s761_s19, %s762_s18  }
  0xc4 PF: > { %s347_s21 = sand.u32 1, %s733_s12   ;;  %p512_p4 = pnand %p446_p10, %p830_p5 }
  0xc5   : > { %s348_s26 = scalar_lea.sflag [#allocation4], %s347_s21 }
  0xc6   : > { %p513_p6 = pneg %p512_p4 }
  0xc8   : > { %728 = dma.done.wait (%p513_p6), %s348_s26, 256  }
  0xc9   : > { %730 = vsyncadd (%p513_p6), %s348_s26, 4294967040  ;;  %s20_s17 = sadd.s32 1, %s753_s17   ;;  %s945_s12 = smov %s737_s13 }
  0xca   : > { %p17_p8 = scmp.ge.s32.totalorder %s20_s17, 4   ;;  %s946_s13 = smov %s741_s14 }
  0xcb   : > { %s947_s14 = smov %s872_s28  ;;  %s948_s15 = smov %s749_s16 }
  0xcc   : > { %s949_s16 = smov %s951_s11  ;;  %19 = sbr.rel (!%p17_p8) target bundleno = 7 (0x7), region = 86 }
  0xd1   :  { %354 = vsyncpa [#allocation3], 1 }
  0xd2   :  { %356 = vsyncpa [#allocation3 + $0x1], 1 }
  0xd3   :  { %357 = vsyncpa [#allocation6], 1 }
  0xd4   :  { %358 = vsyncpa [#allocation4], 1 }
  0xd5   :  { %360 = vsyncpa [#allocation4 + $0x1], 1 }

</bundles_post_ra>
